<compile_context>
chip_gen: v6e
topology: v6e:2x2x1
jax: 0.10.0
libtpu: 0.0.40
codegen_flags: <defaults>
</compile_context>

<pallas_src>
import math
import jax
import jax.numpy as jnp
from jax.experimental import pallas as pl
from jax.experimental.pallas import tpu as pltpu


def _round_up(n, m):
    return ((n + m - 1) // m) * m


def _pad_to(a, shape):
    pads = [(0, t - s) for s, t in zip(a.shape, shape)]
    return jnp.pad(a, pads)


def mlp_kernel(x_ref, w12_ref, b12_ref, w3_ref, b3_ref, o_ref):
    cdt = w12_ref.dtype
    # Fused Linear0+Linear1 (no activation between them): x @ (W1 @ W2) + (b1 @ W2 + b2).
    # bf16 MXU matmul, f32 accumulation; x is cast in-kernel (no wrapper pass over x).
    h = jnp.dot(x_ref[...].astype(cdt), w12_ref[...],
                preferred_element_type=jnp.float32)
    h = h + b12_ref[...]                 # (1, E_pad) broadcast, f32 VPU add
    h = jnp.maximum(h, 0.0)              # ReLU (after layer i == 1)

    # Linear2: (TB, E_pad) @ (E_pad, L_pad), lane-dense on the MXU.
    h = jnp.dot(h.astype(cdt), w3_ref[...], preferred_element_type=jnp.float32)
    h = h + b3_ref[...]

    # Store only the real label columns -> unpadded, low-write-amplification output.
    o_ref[...] = h[:, : o_ref.shape[-1]].astype(o_ref.dtype)


def prepare_params(params, compute_dtype=jnp.bfloat16):
    """One-time weight prep: fold the two activation-free linears (exact, in f32),
    pad the hidden dim to 128 lanes (zero padding is exact), cast to bf16."""
    w1 = params["w1"].astype(jnp.float32)
    b1 = params["b1"].reshape(1, -1).astype(jnp.float32)
    w2 = params["w2"].astype(jnp.float32)
    b2 = params["b2"].reshape(1, -1).astype(jnp.float32)
    w3 = params["w3"].astype(jnp.float32)
    b3 = params["b3"].reshape(1, -1).astype(jnp.float32)

    F = w1.shape[0]
    E = w2.shape[1]
    L = w3.shape[1]
    E_pad = _round_up(E, 128)
    L_pad = _round_up(L, 128)

    w12 = w1 @ w2                        # (F, E), exact f32 fold
    b12 = b1 @ w2 + b2                   # (1, E)

    return {
        # Zero-padded hidden lanes give relu(0 + 0) = 0, and W3's padded rows are
        # zero, so padding contributes exactly nothing to the real outputs.
        "w12": _pad_to(w12, (F, E_pad)).astype(compute_dtype),
        "b12": _pad_to(b12, (1, E_pad)).astype(jnp.float32),
        "w3": _pad_to(w3, (E_pad, L_pad)).astype(compute_dtype),
        "b3": _pad_to(b3, (1, L_pad)).astype(jnp.float32),
        "label_num": L,
    }


def _pick_tile(B, tb_max):
    """Batch tile: as large as possible (<= tb_max), multiple of 16 (bf16 sublane
    packing), shrunk so that tail padding stays minimal."""
    TB = min(tb_max, _round_up(B, 16))
    n_steps = pl.cdiv(B, TB)
    TB = _round_up(pl.cdiv(B, n_steps), 16)
    return TB, n_steps


def nn_forward(x, prepared, *, tb_max=1024):
    """x: (B, feature_num) f32; prepared: output of prepare_params."""
    w12, b12, w3, b3 = prepared["w12"], prepared["b12"], prepared["w3"], prepared["b3"]
    L = prepared["label_num"]
    B, F = x.shape
    E_pad = w12.shape[1]
    L_pad = w3.shape[1]

    TB, n_steps = _pick_tile(B, tb_max)
    B_pad = TB * n_steps
    if B_pad != B:
        x = jnp.pad(x, ((0, B_pad - B), (0, 0)))   # tiny batch-row pad only

    flops = 2 * B_pad * (F * E_pad + E_pad * L_pad)
    bytes_in = (x.size * x.dtype.itemsize
                + w12.size * w12.dtype.itemsize + b12.size * b12.dtype.itemsize
                + w3.size * w3.dtype.itemsize + b3.size * b3.dtype.itemsize)
    bytes_out = B_pad * L * 4

    out = pl.pallas_call(
        mlp_kernel,
        out_shape=jax.ShapeDtypeStruct((B_pad, L), jnp.float32),
        grid=(n_steps,),
        in_specs=[
            # x: tiled along batch, feature dim left at full (unpadded) extent
            pl.BlockSpec((TB, F), lambda i: (i, 0)),
            # weights / biases: same block every step -> stay resident in VMEM
            pl.BlockSpec((F, E_pad), lambda i: (0, 0)),
            pl.BlockSpec((1, E_pad), lambda i: (0, 0)),
            pl.BlockSpec((E_pad, L_pad), lambda i: (0, 0)),
            pl.BlockSpec((1, L_pad), lambda i: (0, 0)),
        ],
        # Output keeps the real label width -> no write amplification.
        out_specs=pl.BlockSpec((TB, L), lambda i: (i, 0)),
        compiler_params=pltpu.CompilerParams(
            dimension_semantics=("parallel",)),   # megacore split on v7x, no-op elsewhere
        cost_estimate=pl.CostEstimate(
            flops=flops, transcendentals=0,
            bytes_accessed=bytes_in + bytes_out),
    )(x, w12, b12, w3, b3)

    return out[:B]


def init_params(key, feature_num, hidden_size, y_emb_dim, label_num):
    """Kaiming-normal weights (std = sqrt(2 / fan_in)), small uniform biases.
    Weights stored (in_features, out_features) so forward is x @ W + b."""
    k1, k2, k3, k4, k5, k6 = jax.random.split(key, 6)

    def kaiming(k, fan_in, fan_out):
        return jax.random.normal(k, (fan_in, fan_out), jnp.float32) * math.sqrt(2.0 / fan_in)

    def bias(k, fan_in, n):
        bound = 1.0 / math.sqrt(fan_in)
        return jax.random.uniform(k, (1, n), jnp.float32, -bound, bound)

    return {
        "w1": kaiming(k1, feature_num, hidden_size),
        "b1": bias(k2, feature_num, hidden_size),
        "w2": kaiming(k3, hidden_size, y_emb_dim),
        "b2": bias(k4, hidden_size, y_emb_dim),
        "w3": kaiming(k5, y_emb_dim, label_num),
        "b3": bias(k6, y_emb_dim, label_num),
    }


def nn_forward_ref_f32(x, p):
    h = x @ p["w1"] + p["b1"]
    h = h @ p["w2"] + p["b2"]
    h = jnp.maximum(h, 0.0)
    return h @ p["w3"] + p["b3"]


def nn_forward_ref_lowp_fused(x, prepared):
    """Pure-JAX mirror of the kernel numerics (fused W12, bf16 matmuls, f32 acc)."""
    cd = prepared["w12"].dtype
    h = jnp.dot(x.astype(cd), prepared["w12"],
                preferred_element_type=jnp.float32) + prepared["b12"]
    h = jnp.maximum(h, 0.0)
    h = jnp.dot(h.astype(cd), prepared["w3"],
                preferred_element_type=jnp.float32) + prepared["b3"]
    return h[:, : prepared["label_num"]]


if __name__ == "__main__":
    # Small shapes consistent with the module's forward.
    feature_num, hidden_size, y_emb_dim, label_num = 32, 64, 16, 10

    key = jax.random.PRNGKey(0)
    kx, kp, kx2 = jax.random.split(key, 3)
    params = init_params(kp, feature_num, hidden_size, y_emb_dim, label_num)
    prepared = prepare_params(params)

    # Case 1: tiny batch (single grid step, tail-padded to 16 rows internally).
    x_small = jax.random.normal(kx, (8, feature_num), jnp.float32)
    out_small = jax.block_until_ready(nn_forward(x_small, prepared))
    assert out_small.shape == (8, label_num)
    ref_lp = nn_forward_ref_lowp_fused(x_small, prepared)
    ref_f32 = nn_forward_ref_f32(x_small, params)
    assert jnp.allclose(out_small, ref_lp, atol=2e-2, rtol=2e-2)
    assert jnp.allclose(out_small, ref_f32, atol=5e-2, rtol=5e-2)

    # Case 2: batch not a multiple of 16 -> exercises adaptive tile + tail padding.
    x_big = jax.random.normal(kx2, (300, feature_num), jnp.float32)
    out_big = jax.block_until_ready(nn_forward(x_big, prepared))
    assert out_big.shape == (300, label_num)
    ref_lp2 = nn_forward_ref_lowp_fused(x_big, prepared)
    ref_f32_2 = nn_forward_ref_f32(x_big, params)
    assert jnp.allclose(out_big, ref_lp2, atol=2e-2, rtol=2e-2)
    assert jnp.allclose(out_big, ref_f32_2, atol=5e-2, rtol=5e-2)

    print("KERNEL_OK")
</pallas_src>

<mosaic_0001>
module attributes {stable_mosaic.version = 11 : i64} {
  func.func @mlp_kernel(%arg0: i32, %arg1: memref<16x32xf32, #tpu.memory_space<vmem>>, %arg2: memref<32x128xbf16, #tpu.memory_space<vmem>>, %arg3: memref<1x128xf32, #tpu.memory_space<vmem>>, %arg4: memref<128x128xbf16, #tpu.memory_space<vmem>>, %arg5: memref<1x128xf32, #tpu.memory_space<vmem>>, %arg6: memref<16x10xf32, #tpu.memory_space<vmem>>) attributes {dimension_semantics = [#tpu.dimension_semantics<parallel>], iteration_bounds = array<i64: 1>, scalar_prefetch = 0 : i64, scratch_operands = 0 : i64, tpu.core_type = #tpu.core_type<tc>, window_params = [{transform_indices = @transform_0, window_bounds = array<i64: 16, 32>}, {pipeline_mode = #tpu.pipeline_mode<synchronous>, transform_indices = @transform_1, window_bounds = array<i64: 32, 128>}, {pipeline_mode = #tpu.pipeline_mode<synchronous>, transform_indices = @transform_2, window_bounds = array<i64: 1, 128>}, {pipeline_mode = #tpu.pipeline_mode<synchronous>, transform_indices = @transform_3, window_bounds = array<i64: 128, 128>}, {pipeline_mode = #tpu.pipeline_mode<synchronous>, transform_indices = @transform_4, window_bounds = array<i64: 1, 128>}, {transform_indices = @transform_5, window_bounds = array<i64: 16, 10>}]} {
    %c0 = arith.constant 0 : index
    %c0_0 = arith.constant 0 : index
    %0 = vector.load %arg1[%c0, %c0_0] : memref<16x32xf32, #tpu.memory_space<vmem>>, vector<16x32xf32>
    %1 = arith.truncf %0 : vector<16x32xf32> to vector<16x32xbf16>
    %c0_1 = arith.constant 0 : index
    %c0_2 = arith.constant 0 : index
    %2 = vector.load %arg2[%c0_1, %c0_2] : memref<32x128xbf16, #tpu.memory_space<vmem>>, vector<32x128xbf16>
    %cst = arith.constant dense<0.000000e+00> : vector<16x128xf32>
    %3 = tpu.matmul %1, %2, %cst {dimension_numbers = #tpu.dot_dimension_numbers<[1], [0], [0], [1], [0, 0, 1, 1], [], []>} : vector<16x32xbf16>, vector<32x128xbf16>, vector<16x128xf32> -> vector<16x128xf32>
    %c0_3 = arith.constant 0 : index
    %c0_4 = arith.constant 0 : index
    %4 = vector.load %arg3[%c0_3, %c0_4] : memref<1x128xf32, #tpu.memory_space<vmem>>, vector<1x128xf32>
    %5 = vector.broadcast %4 : vector<1x128xf32> to vector<16x128xf32>
    %6 = arith.addf %3, %5 : vector<16x128xf32>
    %cst_5 = arith.constant 0.000000e+00 : f32
    %7 = vector.broadcast %cst_5 : f32 to vector<16x128xf32>
    %8 = arith.maximumf %6, %7 : vector<16x128xf32>
    %9 = arith.truncf %8 : vector<16x128xf32> to vector<16x128xbf16>
    %c0_6 = arith.constant 0 : index
    %c0_7 = arith.constant 0 : index
    %10 = vector.load %arg4[%c0_6, %c0_7] : memref<128x128xbf16, #tpu.memory_space<vmem>>, vector<128x128xbf16>
    %cst_8 = arith.constant dense<0.000000e+00> : vector<16x128xf32>
    %11 = tpu.matmul %9, %10, %cst_8 {dimension_numbers = #tpu.dot_dimension_numbers<[1], [0], [0], [1], [0, 0, 1, 1], [], []>} : vector<16x128xbf16>, vector<128x128xbf16>, vector<16x128xf32> -> vector<16x128xf32>
    %c0_9 = arith.constant 0 : index
    %c0_10 = arith.constant 0 : index
    %12 = vector.load %arg5[%c0_9, %c0_10] : memref<1x128xf32, #tpu.memory_space<vmem>>, vector<1x128xf32>
    %13 = vector.broadcast %12 : vector<1x128xf32> to vector<16x128xf32>
    %14 = arith.addf %11, %13 : vector<16x128xf32>
    %15 = vector.extract_strided_slice %14 {offsets = [0, 0], sizes = [16, 10], strides = [1, 1]} : vector<16x128xf32> to vector<16x10xf32>
    %c0_11 = arith.constant 0 : index
    %c0_12 = arith.constant 0 : index
    %16 = vector.load %arg6[%c0_11, %c0_12] : memref<16x10xf32, #tpu.memory_space<vmem>>, vector<16x10xf32>
    tpu.vector_store %arg6[%c0_11, %c0_12], %15 {strides = array<i32>} : memref<16x10xf32, #tpu.memory_space<vmem>>, vector<16x10xf32>,
    return
  }
  func.func @transform_0(%arg0: i32) -> (i32, i32) {
    %c0_i32 = arith.constant 0 : i32
    %c0_i32_0 = arith.constant 0 : i32
    return %arg0, %c0_i32 : i32, i32
  }
  func.func @transform_1(%arg0: i32) -> (i32, i32) {
    %c0_i32 = arith.constant 0 : i32
    %c0_i32_0 = arith.constant 0 : i32
    %c0_i32_1 = arith.constant 0 : i32
    return %c0_i32, %c0_i32_0 : i32, i32
  }
  func.func @transform_2(%arg0: i32) -> (i32, i32) {
    %c0_i32 = arith.constant 0 : i32
    %c0_i32_0 = arith.constant 0 : i32
    %c0_i32_1 = arith.constant 0 : i32
    return %c0_i32, %c0_i32_0 : i32, i32
  }
  func.func @transform_3(%arg0: i32) -> (i32, i32) {
    %c0_i32 = arith.constant 0 : i32
    %c0_i32_0 = arith.constant 0 : i32
    %c0_i32_1 = arith.constant 0 : i32
    return %c0_i32, %c0_i32_0 : i32, i32
  }
  func.func @transform_4(%arg0: i32) -> (i32, i32) {
    %c0_i32 = arith.constant 0 : i32
    %c0_i32_0 = arith.constant 0 : i32
    %c0_i32_1 = arith.constant 0 : i32
    return %c0_i32, %c0_i32_0 : i32, i32
  }
  func.func @transform_5(%arg0: i32) -> (i32, i32) {
    %c0_i32 = arith.constant 0 : i32
    %c0_i32_0 = arith.constant 0 : i32
    return %arg0, %c0_i32 : i32, i32
  }
}

</mosaic_0001>

<bundles_post_ra>
// kernel: tpu_custom_call.1
= control target key start
LH: loop header
LB: loop body
LE: loop exit
PB: predicated region body
PF: predicated region fallthrough
CT: control target
= control target key end

     0   :  { %10 = vsyncpa [#allocation3], 0  ;;  %s493_s0 = inlined_call_operand.hbm [shape: f32[16,32], index: 0, kind: input, shape index: {}]   ;;  %s494_s1 = inlined_call_operand.hbm [shape: bf16[32,128], index: 1, kind: input, shape index: {}]   ;;  %s495_s2 = inlined_call_operand.vmem [shape: f32[1,128], index: 2, kind: input, shape index: {}]   ;;  %s496_s3 = inlined_call_operand.hbm [shape: bf16[128,128], index: 3, kind: input, shape index: {}]   ;;  %s497_s4 = inlined_call_operand.vmem [shape: f32[1,128], index: 4, kind: input, shape index: {}]   ;;  %s498_s5 = inlined_call_operand.hbm [shape: f32[16,10], index: 5, kind: output, shape index: {}]  }
   0x1   :  { %11 = vsyncpa [#allocation6], 0 }
   0x2   :  { %12 = vsyncpa [#allocation4], 0  ;;  %s429_s18 = smov [#allocation5]  }
   0x3   :  { %s30_s19 = sshll.u32 %s429_s18, 4  ;;  %s31_s19 = int_to_ptr.vmem [resolvable:$true] %s30_s19 }
   0x4   :  { %s351_s20 = scalar_lea.vmem %s31_s19, 256  ;;  %p356_p1 = scmp.lt.s32.totalorder %s31_s19, %s31_s19 }
   0x5   :  { %p352_p0 = scmp.ne.s32.totalorder %s31_s19, %s351_s20  ;;  %p357_p2 = scmp.lt.s32.totalorder %s351_s20, %s351_s20 }
   0x7   :  { %p358_p3 = por %p357_p2, %p356_p1 }
   0x9   :  { %p359_p4 = pnand %p358_p3, %p352_p0 }
   0xb   :  { %362 = shalt.err (!%p359_p4)
}
   0xc   :  { %s430_s21 = smov 64   ;;  %s431_s22 = smov 4  }
   0xd   :  { %36 = dma.hbm_to_vmem [thread:$0]  %s494_s1, 256, %s31_s19, [#allocation6], %s430_s21, %s430_s21, %s431_s22  }
   0xe   :  { %s432_s25 = smov [#allocation2]  }
   0xf   :  { %s18_s26 = sshll.u32 %s432_s25, 4  ;;  %s19_s26 = int_to_ptr.vmem [resolvable:$true] %s18_s26 }
  0x10   :  { %s371_s27 = scalar_lea.vmem %s19_s26, 256  ;;  %p376_p6 = scmp.lt.s32.totalorder %s19_s26, %s19_s26 }
  0x11   :  { %p372_p5 = scmp.ne.s32.totalorder %s19_s26, %s371_s27  ;;  %p377_p7 = scmp.lt.s32.totalorder %s371_s27, %s371_s27 }
  0x13   :  { %p378_p8 = por %p377_p7, %p376_p6 }
  0x15   :  { %p379_p9 = pnand %p378_p8, %p372_p5 }
  0x17   :  { %382 = shalt.err (!%p379_p9)
}
  0x18   :  { %s433_s28 = smov 128   ;;  %s434_s29 = smov 8  }
  0x19   :  { %24 = dma.hbm_to_vmem [thread:$0]  %s493_s0, 256, %s19_s26, [#allocation3], %s433_s28, %s433_s28, %s434_s29  }
  0x1a   :  { %s435_s1 = smov [#allocation7]  }
  0x1b   :  { %s44_s7 = sshll.u32 %s435_s1, 4  ;;  %s45_s7 = int_to_ptr.vmem [resolvable:$true] %s44_s7 }
  0x1c   :  { %s391_s8 = scalar_lea.vmem %s45_s7, 1024  ;;  %p396_p11 = scmp.lt.s32.totalorder %s45_s7, %s45_s7 }
  0x1d   :  { %p392_p10 = scmp.ne.s32.totalorder %s45_s7, %s391_s8  ;;  %p397_p12 = scmp.lt.s32.totalorder %s391_s8, %s391_s8 }
  0x1f   :  { %p398_p13 = por %p397_p12, %p396_p11 }
  0x21   :  { %p399_p0 = pnand %p398_p13, %p392_p10 }
  0x23   :  { %402 = shalt.err (!%p399_p0)
}
  0x24   :  { %50 = dma.hbm_to_vmem [thread:$0]  %s496_s3, 1024, %s45_s7, [#allocation6], %s430_s21, %s430_s21, %s431_s22  }
  0x25   :  { %423 = dma.done.wait [#allocation3], 256  }
  0x26   :  { %424 = vsyncadd [#allocation3], 4294967040 }
  0x27   :  { %425 = dma.done.wait [#allocation6], 1280  }
  0x28   :  { %426 = vsyncadd [#allocation6], 4294966016  ;;  %v436_v0 = vmov 0.0   ;;  %vm437_vm0 = vmmov 0   ;;  %v333_v1 = vld [vmem:[#allocation5 + $0x8] sm:$0xff]   ;;  %v334_v2 = vld [vmem:[#allocation5] sm:$0xff]  }
  0x29   :  { %295 = vmatprep.subr.bf16.mxu0 %v436_v0  ;;  %299 = vmatprep.mubr.msk.bf16.mxu0 %vm437_vm0, %v436_v0  ;;  %v63_v3 = vld [vmem:[#allocation2] sm:$0xff]  ;;  %v64_v4 = vld [vmem:[#allocation2 + $0x8] sm:$0xff]  ;;  %v335_v5 = vld [vmem:[#allocation7 + $0x38] sm:$0xff]   ;;  %vm89_vm1 = vcmask 261120   ;;  %vm249_vm2 = vcmask 80896   ;;  %s438_s13 = smov [#allocation8]  }
  0x2a   :  { %303 = vmatprep.subr.bf16.mxu1 %v436_v0  ;;  %319 = vmatprep.mubr.msk.bf16.mxu1 %vm437_vm0, %v436_v0  ;;  %v65_v6 = vpack.c.bf16 %v64_v4, %v63_v3  ;;  %v336_v7 = vld [vmem:[#allocation7 + $0x30] sm:$0xff]   ;;  %v337_v8 = vld [vmem:[#allocation7 + $0x28] sm:$0xff]   ;;  %v338_v9 = vld [vmem:[#allocation7 + $0x20] sm:$0xff]  }
  0x2b   :  { %296 = vmatpush3.bf16.msra.mxu0 %v333_v1  ;;  %304 = vmatpush3.bf16.msra.mxu1 %v335_v5  ;;  %v339_v10 = vld [vmem:[#allocation7 + $0x18] sm:$0xff]   ;;  %v340_v11 = vld [vmem:[#allocation7 + $0x10] sm:$0xff]   ;;  %v341_v12 = vld [vmem:[#allocation7 + $0x8] sm:$0xff]  }
  0x2c   :  { %297 = vmatprep.subr.bf16.mxu0 %v436_v0  ;;  %305 = vmatprep.subr.bf16.mxu1 %v436_v0  ;;  %v342_v13 = vld [vmem:[#allocation7] sm:$0xff]  }
  0x2d   :  { %v270_v14 = vld [vmem:[%s495_s2] ss:$0 sm:$0xff]  ;;  %s257_s2 = sshll.u32 %s438_s13, 4  ;;  %s258_s2 = int_to_ptr.vmem [resolvable:$true] %s257_s2 }
  0x2e   :  { %v274_v24 = vld [vmem:[%s497_s4] ss:$0 sm:$0xff]  ;;  %s403_s14 = scalar_lea.vmem %s258_s2, 256  ;;  %p408_p2 = scmp.lt.s32.totalorder %s258_s2, %s258_s2 }
  0x2f   :  { %298 = vmatpush3.bf16.msra.mxu0 %v334_v2  ;;  %306 = vmatpush3.bf16.msra.mxu1 %v336_v7  ;;  %p404_p1 = scmp.ne.s32.totalorder %s258_s2, %s403_s14  ;;  %p409_p3 = scmp.lt.s32.totalorder %s403_s14, %s403_s14 }
  0x30   :  { %307 = vmatprep.subr.bf16.mxu1 %v436_v0 }
  0x31   :  { %p410_p4 = por %p409_p3, %p408_p2 }
  0x32   :  { %300 = vmatmul.mubr.msk.bf16.vlgmr.msra.gmra.mxu0 %vm89_vm1, %v65_v6 }
  0x33   :  { %308 = vmatpush3.bf16.msra.mxu1 %v337_v8  ;;  %p411_p5 = pnand %p410_p4, %p404_p1 }
  0x34   :  { %309 = vmatprep.subr.bf16.mxu1 %v436_v0 }
  0x37   :  { %310 = vmatpush3.bf16.msra.mxu1 %v338_v9 }
  0x38   :  { %311 = vmatprep.subr.bf16.mxu1 %v436_v0 }
  0x3b   :  { %312 = vmatpush3.bf16.msra.mxu1 %v339_v10 }
  0x3c   :  { %313 = vmatprep.subr.bf16.mxu1 %v436_v0 }
  0x3f   :  { %314 = vmatpush3.bf16.msra.mxu1 %v340_v11 }
  0x40   :  { %315 = vmatprep.subr.bf16.mxu1 %v436_v0 }
  0x43   :  { %316 = vmatpush3.bf16.msra.mxu1 %v341_v12 }
  0x44   :  { %317 = vmatprep.subr.bf16.mxu1 %v436_v0 }
  0x47   :  { %318 = vmatpush3.bf16.msra.mxu1 %v342_v13 }
  0xf2   :  { %v127_v15 = vpop.f32.mrf.mxu0 }
  0xf3   :  { %v128_v17 = vadd.f32 %v270_v14, %v127_v15 }
  0xf4   :  { %v301_v16 = vpop.f32.mrf.mxu0 }
  0xf5   :  { %v134_v21 = vmax.f32 %v128_v17, 0.0 }
  0xf6   :  { %v130_v18 = vpop.f32.mrf.mxu0 }
  0xf7   :  { %v131_v19 = vadd.f32 %v270_v14, %v130_v18 }
  0xf8   :  { %v302_v20 = vpop.f32.mrf.mxu0 }
  0xf9   :  { %v135_v22 = vmax.f32 %v131_v19, 0.0 }
  0xfb   :  { %v136_v23 = vpack.c.bf16 %v135_v22, %v134_v21 }
  0xfd   :  { %320 = vmatmul.mubr.bf16.vlgmr.msra.gmra.mxu1 %v136_v23 }
 0x1bd   :  { %v242_v25 = vpop.f32.mrf.mxu1 }
 0x1be   :  { %v243_v26 = vadd.f32 %v274_v24, %v242_v25 }
 0x1bf   :  { %v321_v27 = vpop.f32.mrf.mxu1 }
 0x1c0   :  { %250 = vst.msk [vmem:[#allocation8] sm:$0xff] %vm249_vm2, %v243_v26 }
 0x1c1   :  { %v245_v28 = vpop.f32.mrf.mxu1 }
 0x1c2   :  { %v246_v29 = vadd.f32 %v274_v24, %v245_v28 }
 0x1c3   :  { %v322_v30 = vpop.f32.mrf.mxu1 }
 0x1c4   :  { %251 = vst.msk [vmem:[#allocation8 + $0x8] sm:$0xff] %vm249_vm2, %v246_v29 }
 0x1c5   :  { %414 = shalt.err (!%p411_p5)
}
 0x1c6   :  { %263 = dma.vmem_to_hbm [thread:$0]  %s258_s2, 256, %s498_s5, [#allocation4], %s433_s28, %s433_s28, %s434_s29  }
 0x1c7   :  { %427 = dma.done.wait [#allocation4], 256  }
 0x1c8   :  { %428 = vsyncadd [#allocation4], 4294967040 }
 0x1c9   :  { %267 = vsyncpa [#allocation3], 1 }
 0x1ca   :  { %268 = vsyncpa [#allocation6], 1 }
 0x1cb   :  { %269 = vsyncpa [#allocation4], 1 }

</bundles_post_ra>
